<compile_context>
chip_gen: v5e
topology: v5e:2x2
jax: 0.10.0
libtpu: 0.0.40
codegen_flags: <defaults>
</compile_context>

<pallas_src>
from functools import partial

import jax
import jax.numpy as jnp
from jax.experimental import pallas as pl
from jax.experimental.pallas import tpu as pltpu

_LANES = 128
# f32-accurate MXU passes; at these contraction sizes the extra passes are free.
_MXU_PRECISION = jax.lax.Precision.HIGHEST


def _round_up(n, m):
    return ((n + m - 1) // m) * m


def _lightse_nn_kernel(x_ref, p_ref, o_ref, *, F, Fp, H, O,
                       r_se, r_w1, r_w2, r_w3, r_b):
    """One batch tile: mean over T -> LightSE -> Linear/Sigmoid x2 -> Linear."""

    def dot(h, w):
        # h: (BT, K), w: (K, 128) = W^T zero-padded on both axes.
        return jnp.dot(h, w, preferred_element_type=jnp.float32,
                       precision=_MXU_PRECISION)

    x = x_ref[...].astype(jnp.float32)            # (BT, T, Fp)

    # --- LightSENNModel.forward: mean over the sequence axis ---
    xm = jnp.mean(x, axis=1)                      # (BT, Fp); padded feature lanes are 0

    biases = p_ref[pl.ds(r_b, 8), :]              # (8, 128): rows 0..3 = bse, b1, b2, b3
    bse, b1, b2, b3 = (biases[i:i + 1, :] for i in range(4))

    # --- LightSE (spatial S == 1  =>  z == xm) ---
    wse = p_ref[pl.ds(r_se, Fp), :]               # (Fp, 128), W_se^T zero-padded
    a = (dot(xm, wse) + bse)[:, :Fp]              # (BT, Fp)
    if Fp != F:                                   # keep padded features out of the softmax
        lane = jax.lax.broadcasted_iota(jnp.int32, a.shape, 1)
        a = jnp.where(lane < F, a, -jnp.inf)
    a = a - jnp.max(a, axis=1, keepdims=True)
    e = jnp.exp(a)
    a = e * pl.reciprocal(jnp.sum(e, axis=1, keepdims=True), approx=True)  # EUP rcp
    # flatten(x + x * a.unsqueeze(1)) == xm * (1 + a)  for S == 1
    h = xm * (1.0 + a)                            # (BT, Fp); padded lanes stay 0

    # --- Linear(F, H) -> Dropout -> Sigmoid ---
    # TODO(synk): Dropout(p=0.9) is stochastic in train mode; modeled as eval identity.
    w1 = p_ref[pl.ds(r_w1, Fp), :]                # (Fp, 128)
    h = jax.nn.sigmoid(dot(h, w1) + b1)           # (BT, 128); lanes >= H become sigmoid(0)=0.5

    # --- Linear(H, H) -> Dropout -> Sigmoid ---
    # Contract the full 128 lanes: weight rows >= H are zero in the slab, so the
    # 0.5 garbage in padded activation lanes contributes nothing.
    w2 = p_ref[pl.ds(r_w2, _LANES), :]            # (128, 128)
    h = jax.nn.sigmoid(dot(h, w2) + b2)           # (BT, 128)

    # --- Linear(H, O) ---
    w3 = p_ref[pl.ds(r_w3, _LANES), :]            # (128, 128)
    y = dot(h, w3) + b3                           # (BT, 128); lanes >= O are exact 0

    # Single unmasked, lane-dense store; the wrapper slices [:B, :O].
    o_ref[...] = y


def _pack_params(params):
    """Pack all weights/biases into one (rows, 128) f32 slab (done ONCE).

    Weights are stored transposed (in_features rows, out_features lanes),
    zero-padded: padded output lanes stay zero (lane-dense output, zero padded
    pre-activations) and padded input rows stay zero (garbage activation lanes
    are annihilated when contracting the full 128 lanes).
    """
    wse, bse, w1, b1, w2, b2, w3, b3 = params
    F, H, O = wse.shape[0], w1.shape[0], w3.shape[0]
    assert max(F, H, O) <= _LANES, "single 128-lane slab packing assumes <=128 features"
    Fp = _round_up(F, 8)

    r_se = 0
    r_w1 = r_se + Fp
    r_w2 = r_w1 + Fp
    r_w3 = r_w2 + _LANES
    r_b = r_w3 + _LANES
    rows = r_b + 8

    f32 = lambda a: jnp.asarray(a, jnp.float32)
    slab = jnp.zeros((rows, _LANES), jnp.float32)
    slab = slab.at[r_se:r_se + F, :F].set(f32(wse).T)
    slab = slab.at[r_w1:r_w1 + F, :H].set(f32(w1).T)
    slab = slab.at[r_w2:r_w2 + H, :H].set(f32(w2).T)
    slab = slab.at[r_w3:r_w3 + H, :O].set(f32(w3).T)
    slab = slab.at[r_b + 0, :F].set(f32(bse))
    slab = slab.at[r_b + 1, :H].set(f32(b1))
    slab = slab.at[r_b + 2, :H].set(f32(b2))
    slab = slab.at[r_b + 3, :O].set(f32(b3))
    dims = dict(F=F, Fp=Fp, H=H, O=O,
                r_se=r_se, r_w1=r_w1, r_w2=r_w2, r_w3=r_w3, r_b=r_b)
    return slab, dims


def _forward_impl(x, slab, *, F, Fp, H, O, r_se, r_w1, r_w2, r_w3, r_b,
                  batch_tile, x_dtype):
    B, T, S, F_in = x.shape
    assert S == 1, "LightSENNModel only type-checks for spatial dim S == 1"
    assert F_in == F, "input feature dim does not match the packed parameters"

    x3 = x.reshape(B, T, F)
    if Fp != F:
        x3 = jnp.pad(x3, ((0, 0), (0, 0), (0, Fp - F)))
    # Optional bf16 HBM storage for the only B*T-scaled input (most useful on
    # v6e's lower HBM BW); compute is f32 in-kernel.
    x3 = x3.astype(x_dtype)

    if batch_tile is None:
        # Aim for >= 2 grid steps when B allows (v7x: both TensorCores busy),
        # 128-512 rows per tile for real batches, capped at ~8 MiB of x block.
        cap = max(8, (((8 << 20) // (T * Fp * 4)) // 8) * 8)
        batch_tile = min(512, cap, max(8, _round_up(-(-B // 2), 8)))
    BT = batch_tile
    assert BT % 8 == 0 and BT >= 8, "batch_tile must be a multiple of 8"

    B_pad = _round_up(B, BT)
    if B_pad != B:
        x3 = jnp.pad(x3, ((0, B_pad - B), (0, 0), (0, 0)))

    kernel = partial(_lightse_nn_kernel, F=F, Fp=Fp, H=H, O=O, r_se=r_se,
                     r_w1=r_w1, r_w2=r_w2, r_w3=r_w3, r_b=r_b)
    out = pl.pallas_call(
        kernel,
        out_shape=jax.ShapeDtypeStruct((B_pad, _LANES), jnp.float32),
        grid=(B_pad // BT,),
        in_specs=[
            # TODO(synk): for production-scale T, feed x as (B, T*F) and reduce
            # in-kernel for denser vregs / less VMEM per block.
            pl.BlockSpec((BT, T, Fp), lambda i: (i, 0, 0)),
            # Constant index map: the ~150 KiB slab is fetched once and stays
            # resident across the batch grid.  (pipeline_mode=pl.Buffered(1)
            # would also drop the unused 2nd buffer; skipped - negligible.)
            pl.BlockSpec(slab.shape, lambda i: (0, 0)),
        ],
        out_specs=pl.BlockSpec((BT, _LANES), lambda i: (i, 0)),
        compiler_params=pltpu.CompilerParams(
            dimension_semantics=("parallel",)),   # batch tiles split over v7x's 2 TCs
    )(x3, slab)
    return out[:B, :O]


def make_lightse_nn_forward(params, *, batch_tile=None, x_dtype=jnp.float32):
    """Pack the parameter slab ONCE and return a jitted forward fn: x -> (B, n_output)."""
    slab, dims = _pack_params(params)
    fwd = jax.jit(partial(_forward_impl, batch_tile=batch_tile, x_dtype=x_dtype, **dims))
    return lambda x: fwd(x, slab)


def lightse_nn_forward(x, params, *, batch_tile=None, x_dtype=jnp.float32):
    """One-off convenience wrapper (re-packs the slab; prefer make_lightse_nn_forward)."""
    return make_lightse_nn_forward(params, batch_tile=batch_tile, x_dtype=x_dtype)(x)


def init_params(key, n_input, n_hidden, n_output):
    """Deterministic torch.nn.Linear-style init: U(-1/sqrt(fan_in), 1/sqrt(fan_in)).
    Weights kept in PyTorch-native (out, in) layout; biases are (out,)."""
    def linear(k, fan_in, fan_out):
        bound = 1.0 / (fan_in ** 0.5)
        kw, kb = jax.random.split(k)
        w = jax.random.uniform(kw, (fan_out, fan_in), jnp.float32, -bound, bound)
        b = jax.random.uniform(kb, (fan_out,), jnp.float32, -bound, bound)
        return w, b

    k_se, k1, k2, k3 = jax.random.split(key, 4)
    wse, bse = linear(k_se, n_input, n_input)        # LightSE._linear
    w1, b1 = linear(k1, n_input, n_hidden)           # Linear(n_input, n_hidden)
    w2, b2 = linear(k2, n_hidden, n_hidden)          # Linear(n_hidden, n_hidden)
    w3, b3 = linear(k3, n_hidden, n_output)          # Linear(n_hidden, n_output)
    return (wse, bse, w1, b1, w2, b2, w3, b3)


def reference_forward(x, params):
    """Pure-JAX mirror of the PyTorch forward (dropout in eval mode)."""
    wse, bse, w1, b1, w2, b2, w3, b3 = params
    xm = jnp.mean(x, axis=1)                         # (B, S, F)
    z = jnp.mean(xm, axis=1)                         # (B, F)
    a = jax.nn.softmax(z @ wse.T + bse, axis=1)      # (B, F)
    out = xm * a[:, None, :]
    h = (xm + out).reshape(x.shape[0], -1)           # flatten(start_dim=1)
    h = jax.nn.sigmoid(h @ w1.T + b1)
    h = jax.nn.sigmoid(h @ w2.T + b2)
    return h @ w3.T + b3


if __name__ == "__main__":
    n_input, n_hidden, n_output = 16, 32, 8
    T, S = 8, 1

    key = jax.random.PRNGKey(0)
    kx1, kx2, kp = jax.random.split(key, 3)
    params = init_params(kp, n_input, n_hidden, n_output)

    fwd = make_lightse_nn_forward(params)            # pack slab once + jit wrapper

    # approx=True EUP reciprocal in the softmax -> slightly relaxed tolerance.
    tol = dict(rtol=2e-3, atol=2e-3)

    # Tiny toy batch: single 8-row tile, grid=(1,).
    x_small = jax.random.normal(kx1, (2, T, S, n_input), jnp.float32)
    out_small = jax.block_until_ready(fwd(x_small))
    ref_small = reference_forward(x_small, params)
    assert out_small.shape == (2, n_output), out_small.shape
    assert jnp.allclose(out_small, ref_small, **tol), "kernel mismatch vs reference (small)"

    # Larger batch: 128-row tiles, grid=(2,) so the "parallel" axis can split
    # across v7x's two TensorCores.
    x_big = jax.random.normal(kx2, (256, T, S, n_input), jnp.float32)
    out_big = jax.block_until_ready(fwd(x_big))
    ref_big = reference_forward(x_big, params)
    assert out_big.shape == (256, n_output), out_big.shape
    assert jnp.allclose(out_big, ref_big, **tol), "kernel mismatch vs reference (large)"

    print("KERNEL_OK")
</pallas_src>

<mosaic_0001>
module attributes {stable_mosaic.version = 11 : i64} {
  func.func @_lightse_nn_kernel(%arg0: i32, %arg1: memref<8x8x16xf32, #tpu.memory_space<vmem>>, %arg2: memref<296x128xf32, #tpu.memory_space<vmem>>, %arg3: memref<8x128xf32, #tpu.memory_space<vmem>>) attributes {dimension_semantics = [#tpu.dimension_semantics<parallel>], iteration_bounds = array<i64: 1>, scalar_prefetch = 0 : i64, scratch_operands = 0 : i64, tpu.core_type = #tpu.core_type<tc>, window_params = [{transform_indices = @transform_0, window_bounds = array<i64: 8, 8, 16>}, {pipeline_mode = #tpu.pipeline_mode<synchronous>, transform_indices = @transform_1, window_bounds = array<i64: 296, 128>}, {transform_indices = @transform_2, window_bounds = array<i64: 8, 128>}]} {
    %c0 = arith.constant 0 : index
    %c0_0 = arith.constant 0 : index
    %c0_1 = arith.constant 0 : index
    %0 = vector.load %arg1[%c0, %c0_0, %c0_1] : memref<8x8x16xf32, #tpu.memory_space<vmem>>, vector<8x8x16xf32>
    %cst = arith.constant dense<0.000000e+00> : vector<8x16xf32>
    %1 = vector.multi_reduction <add>, %0, %cst [1] : vector<8x8x16xf32> to vector<8x16xf32>
    %cst_2 = arith.constant 8.000000e+00 : f32
    %2 = vector.broadcast %cst_2 : f32 to vector<8x16xf32>
    %3 = arith.divf %1, %2 : vector<8x16xf32>
    %c288 = arith.constant 288 : index
    %c0_3 = arith.constant 0 : index
    %4 = vector.load %arg2[%c288, %c0_3] : memref<296x128xf32, #tpu.memory_space<vmem>>, vector<8x128xf32>
    %5 = vector.extract_strided_slice %4 {offsets = [0, 0], sizes = [1, 128], strides = [1, 1]} : vector<8x128xf32> to vector<1x128xf32>
    %6 = vector.extract_strided_slice %4 {offsets = [1, 0], sizes = [1, 128], strides = [1, 1]} : vector<8x128xf32> to vector<1x128xf32>
    %7 = vector.extract_strided_slice %4 {offsets = [2, 0], sizes = [1, 128], strides = [1, 1]} : vector<8x128xf32> to vector<1x128xf32>
    %8 = vector.extract_strided_slice %4 {offsets = [3, 0], sizes = [1, 128], strides = [1, 1]} : vector<8x128xf32> to vector<1x128xf32>
    %c0_4 = arith.constant 0 : index
    %c0_5 = arith.constant 0 : index
    %9 = vector.load %arg2[%c0_4, %c0_5] : memref<296x128xf32, #tpu.memory_space<vmem>>, vector<16x128xf32>
    %cst_6 = arith.constant dense<0.000000e+00> : vector<8x128xf32>
    %10 = tpu.matmul %3, %9, %cst_6 {dimension_numbers = #tpu.dot_dimension_numbers<[1], [0], [0], [1], [0, 0, 1, 1], [], []>, precision = #tpu.contract_precision<fp32>} : vector<8x16xf32>, vector<16x128xf32>, vector<8x128xf32> -> vector<8x128xf32>
    %11 = vector.broadcast %5 : vector<1x128xf32> to vector<8x128xf32>
    %12 = arith.addf %10, %11 : vector<8x128xf32>
    %13 = vector.extract_strided_slice %12 {offsets = [0, 0], sizes = [8, 16], strides = [1, 1]} : vector<8x128xf32> to vector<8x16xf32>
    %cst_7 = arith.constant dense<0xFF800000> : vector<8xf32>
    %14 = vector.multi_reduction <maximumf>, %13, %cst_7 [1] : vector<8x16xf32> to vector<8xf32>
    %15 = vector.shape_cast %14 : vector<8xf32> to vector<8x1xf32>
    %16 = vector.broadcast %15 : vector<8x1xf32> to vector<8x16xf32>
    %17 = arith.subf %13, %16 : vector<8x16xf32>
    %18 = math.exp %17 : vector<8x16xf32>
    %cst_8 = arith.constant dense<0.000000e+00> : vector<8xf32>
    %19 = vector.multi_reduction <add>, %18, %cst_8 [1] : vector<8x16xf32> to vector<8xf32>
    %20 = vector.shape_cast %19 : vector<8xf32> to vector<8x1xf32>
    %21 = tpu.reciprocal %20 {approx = true} : vector<8x1xf32> -> vector<8x1xf32>
    %22 = vector.broadcast %21 : vector<8x1xf32> to vector<8x16xf32>
    %23 = arith.mulf %18, %22 : vector<8x16xf32>
    %cst_9 = arith.constant 1.000000e+00 : f32
    %24 = vector.broadcast %cst_9 : f32 to vector<8x16xf32>
    %25 = arith.addf %24, %23 : vector<8x16xf32>
    %26 = arith.mulf %3, %25 : vector<8x16xf32>
    %c16 = arith.constant 16 : index
    %c0_10 = arith.constant 0 : index
    %27 = vector.load %arg2[%c16, %c0_10] : memref<296x128xf32, #tpu.memory_space<vmem>>, vector<16x128xf32>
    %cst_11 = arith.constant dense<0.000000e+00> : vector<8x128xf32>
    %28 = tpu.matmul %26, %27, %cst_11 {dimension_numbers = #tpu.dot_dimension_numbers<[1], [0], [0], [1], [0, 0, 1, 1], [], []>, precision = #tpu.contract_precision<fp32>} : vector<8x16xf32>, vector<16x128xf32>, vector<8x128xf32> -> vector<8x128xf32>
    %29 = vector.broadcast %6 : vector<1x128xf32> to vector<8x128xf32>
    %30 = arith.addf %28, %29 : vector<8x128xf32>
    %31 = arith.negf %30 : vector<8x128xf32>
    %32 = math.exp %31 : vector<8x128xf32>
    %cst_12 = arith.constant 1.000000e+00 : f32
    %33 = vector.broadcast %cst_12 : f32 to vector<8x128xf32>
    %34 = arith.addf %33, %32 : vector<8x128xf32>
    %35 = arith.divf %33, %34 : vector<8x128xf32>
    %c32 = arith.constant 32 : index
    %c0_13 = arith.constant 0 : index
    %36 = vector.load %arg2[%c32, %c0_13] : memref<296x128xf32, #tpu.memory_space<vmem>>, vector<128x128xf32>
    %cst_14 = arith.constant dense<0.000000e+00> : vector<8x128xf32>
    %37 = tpu.matmul %35, %36, %cst_14 {dimension_numbers = #tpu.dot_dimension_numbers<[1], [0], [0], [1], [0, 0, 1, 1], [], []>, precision = #tpu.contract_precision<fp32>} : vector<8x128xf32>, vector<128x128xf32>, vector<8x128xf32> -> vector<8x128xf32>
    %38 = vector.broadcast %7 : vector<1x128xf32> to vector<8x128xf32>
    %39 = arith.addf %37, %38 : vector<8x128xf32>
    %40 = arith.negf %39 : vector<8x128xf32>
    %41 = math.exp %40 : vector<8x128xf32>
    %cst_15 = arith.constant 1.000000e+00 : f32
    %42 = vector.broadcast %cst_15 : f32 to vector<8x128xf32>
    %43 = arith.addf %42, %41 : vector<8x128xf32>
    %44 = arith.divf %42, %43 : vector<8x128xf32>
    %c160 = arith.constant 160 : index
    %c0_16 = arith.constant 0 : index
    %45 = vector.load %arg2[%c160, %c0_16] : memref<296x128xf32, #tpu.memory_space<vmem>>, vector<128x128xf32>
    %cst_17 = arith.constant dense<0.000000e+00> : vector<8x128xf32>
    %46 = tpu.matmul %44, %45, %cst_17 {dimension_numbers = #tpu.dot_dimension_numbers<[1], [0], [0], [1], [0, 0, 1, 1], [], []>, precision = #tpu.contract_precision<fp32>} : vector<8x128xf32>, vector<128x128xf32>, vector<8x128xf32> -> vector<8x128xf32>
    %47 = vector.broadcast %8 : vector<1x128xf32> to vector<8x128xf32>
    %48 = arith.addf %46, %47 : vector<8x128xf32>
    %c0_18 = arith.constant 0 : index
    %c0_19 = arith.constant 0 : index
    %49 = vector.load %arg3[%c0_18, %c0_19] : memref<8x128xf32, #tpu.memory_space<vmem>>, vector<8x128xf32>
    tpu.vector_store %arg3[%c0_18, %c0_19], %48 {strides = array<i32>} : memref<8x128xf32, #tpu.memory_space<vmem>>, vector<8x128xf32>,
    return
  }
  func.func @transform_0(%arg0: i32) -> (i32, i32, i32) {
    %c0_i32 = arith.constant 0 : i32
    %c0_i32_0 = arith.constant 0 : i32
    %c0_i32_1 = arith.constant 0 : i32
    return %arg0, %c0_i32, %c0_i32_0 : i32, i32, i32
  }
  func.func @transform_1(%arg0: i32) -> (i32, i32) {
    %c0_i32 = arith.constant 0 : i32
    %c0_i32_0 = arith.constant 0 : i32
    %c0_i32_1 = arith.constant 0 : i32
    return %c0_i32, %c0_i32_0 : i32, i32
  }
  func.func @transform_2(%arg0: i32) -> (i32, i32) {
    %c0_i32 = arith.constant 0 : i32
    %c0_i32_0 = arith.constant 0 : i32
    return %arg0, %c0_i32 : i32, i32
  }
}

</mosaic_0001>

<bundles_post_ra>
// kernel: _forward_impl.1
= control target key start
LH: loop header
LB: loop body
LE: loop exit
PB: predicated region body
PF: predicated region fallthrough
CT: control target
= control target key end

     0   :  { %7 = vsyncpa [#allocation3], 0  ;;  %s1323_s12 = smov [#allocation2]   ;;  %s1324_s14 = smov 128   ;;  %s1899_s0 = inlined_call_operand.vmem [shape: f32[8,8,16], index: 0, kind: input, shape index: {}]   ;;  %s1900_s1 = inlined_call_operand.hbm [shape: f32[296,128], index: 1, kind: input, shape index: {}]   ;;  %s1901_s2 = inlined_call_operand.vmem [shape: f32[8,128], index: 2, kind: output, shape index: {}]  }
   0x1   :  { %s14_s11 = sshll.u32 %s1900_s1, 4  ;;  %s16_s13 = sshll.u32 %s1323_s12, 4  ;;  %s15_s11 = int_to_ptr.hbm [resolvable:$true] %s14_s11  ;;  %s17_s13 = int_to_ptr.vmem [resolvable:$true] %s16_s13 }
   0x2   :  { %s1325_s15 = smov 8  }
   0x3   :  { %22 = dma.hbm_to_vmem [thread:$0]  %s15_s11, 4736, %s17_s13, [#allocation3], %s1324_s14, %s1324_s14, %s1325_s15  }
   0x4   :  { %1321 = dma.done.wait [#allocation3], 4736  }
   0x5   :  { %1322 = vsyncadd [#allocation3], 4294962560  ;;  %vm35_vm0 = vcmask 130048   ;;  %v109_v0 = vld [vmem:[#allocation2 + $0x8] sm:$0xff]  ;;  %v108_v1 = vld [vmem:[#allocation2] sm:$0xff]  ;;  %v1326_v14 = vmov 8.0  }
   0x6   :  { %v27_v2 = vld [vmem:[%s1899_s0] sm:$0xff]  ;;  %v1348_v3 = vand.u32 4294901760, %v109_v0  ;;  %v1350_v4 = vand.u32 4294901760, %v108_v1  ;;  %v28_v5 = vld [vmem:[%s1899_s0 + $0x8] sm:$0xff]  ;;  %v29_v6 = vld [vmem:[%s1899_s0 + $0x10] sm:$0xff]  ;;  %1282 = vrcp.f32 %v1326_v14  ;;  %vm119_vm2 = vcmask 1041409  }
   0x7   :  { %v30_v7 = vld [vmem:[%s1899_s0 + $0x18] sm:$0xff]  ;;  %v36_v8 = vsel %vm35_vm0, %v27_v2, 0.0  ;;  %v31_v9 = vld [vmem:[%s1899_s0 + $0x20] sm:$0xff]  ;;  %v32_v10 = vld [vmem:[%s1899_s0 + $0x28] sm:$0xff]  ;;  %v43_v12 = vsel %vm35_vm0, %v28_v5, 0.0  ;;  %v50_v13 = vsel %vm35_vm0, %v29_v6, 0.0 }
   0x8   :  { %v37_v11 = vrot.slane %v36_v8, 4  ;;  %v177_v15 = vsub.f32 %v109_v0, %v1348_v3  ;;  %150 = vmatpush.msra.mxu0 %v1348_v3  ;;  %v1373_v16 = vsub.f32 %v108_v1, %v1350_v4  ;;  %234 = vmatpush.msra.mxu3 %v1348_v3  ;;  %v33_v17 = vld [vmem:[%s1899_s0 + $0x30] sm:$0xff]  ;;  %v34_v18 = vld [vmem:[%s1899_s0 + $0x38] sm:$0xff]  ;;  %v44_v19 = vrot.slane %v43_v12, 4 }
   0x9   :  { %v51_v20 = vrot.slane %v50_v13, 4  ;;  %v57_v22 = vsel %vm35_vm0, %v30_v7, 0.0  ;;  %v64_v23 = vsel %vm35_vm0, %v31_v9, 0.0  ;;  %v71_v24 = vsel %vm35_vm0, %v32_v10, 0.0 }
   0xa   :  { %v38_v21 = vadd.f32 %v37_v11, %v36_v8  ;;  %209 = vmatpush.msra.mxu2 %v177_v15  ;;  %v45_v25 = vadd.f32 %v44_v19, %v43_v12  ;;  %v58_v27 = vrot.slane %v57_v22, 4  ;;  %v65_v28 = vrot.slane %v64_v23, 4  ;;  %152 = vmatpush.msra.mxu0 %v1350_v4 }
   0xb   :  { %v52_v26 = vadd.f32 %v51_v20, %v50_v13  ;;  %v72_v30 = vrot.slane %v71_v24, 4  ;;  %v78_v31 = vsel %vm35_vm0, %v33_v17, 0.0  ;;  %v85_v32 = vsel %vm35_vm0, %v34_v18, 0.0  ;;  %236 = vmatpush.msra.mxu3 %v1350_v4 }
   0xc   :  { %v39_v29 = vrot.slane %v38_v21, 2  ;;  %212 = vmatpush.msra.mxu2 %v1373_v16  ;;  %v46_v33 = vrot.slane %v45_v25, 2  ;;  %v59_v35 = vadd.f32 %v58_v27, %v57_v22  ;;  %v66_v36 = vadd.f32 %v65_v28, %v64_v23  ;;  %v1283_v37 = vpop.eup %1282 }
   0xd   :  { %v53_v34 = vrot.slane %v52_v26, 2  ;;  %v73_v38 = vadd.f32 %v72_v30, %v71_v24  ;;  %v79_v39 = vrot.slane %v78_v31, 4  ;;  %v86_v40 = vrot.slane %v85_v32, 4 }
   0xe   :  { %v40_v41 = vadd.f32 %v39_v29, %v38_v21  ;;  %v60_v42 = vrot.slane %v59_v35, 2  ;;  %v67_v43 = vrot.slane %v66_v36, 2  ;;  %v47_v44 = vadd.f32 %v46_v33, %v45_v25 }
   0xf   :  { %v74_v45 = vrot.slane %v73_v38, 2  ;;  %v80_v46 = vadd.f32 %v79_v39, %v78_v31  ;;  %v87_v47 = vadd.f32 %v86_v40, %v85_v32  ;;  %v54_v48 = vadd.f32 %v53_v34, %v52_v26  ;;  %v1427_v40 = vld [vmem:[#allocation2 + $0x120] sm:$0xff] }
  0x10   :  { %v61_v49 = vadd.f32 %v60_v42, %v59_v35  ;;  %v68_v50 = vadd.f32 %v67_v43, %v66_v36  ;;  %v41_v53 = vrot.slane %v40_v41, 1  ;;  %v48_v55 = vrot.slane %v47_v44, 1 }
  0x11   :  { %v81_v51 = vrot.slane %v80_v46, 2  ;;  %v88_v52 = vrot.slane %v87_v47, 2  ;;  %v75_v54 = vadd.f32 %v74_v45, %v73_v38  ;;  %v93_v58 = vmul.f32 8.0, %v1283_v37 }
  0x12   :  { %v55_v59 = vrot.slane %v54_v48, 1  ;;  %v62_v60 = vrot.slane %v61_v49, 1  ;;  %v178_v61 = vand.u32 4294901760, %v177_v15  ;;  %v184_v62 = vand.u32 4294901760, %v1373_v16 }
  0x13   :  { %v82_v56 = vadd.f32 %v81_v51, %v80_v46  ;;  %v89_v57 = vadd.f32 %v88_v52, %v87_v47  ;;  %v69_v63 = vrot.slane %v68_v50, 1  ;;  %v94_v0 = vsub.f32 1.0, %v93_v58 }
  0x14   :  { %vm97_vm1 = vweird.f32 %v1283_v37  ;;  %v42_v1 = vadd.f32 %v41_v53, %v40_v41  ;;  %v76_v2 = vrot.slane %v75_v54, 1  ;;  %v179_v5 = vsub.f32 %v177_v15, %v178_v61  ;;  %261 = vmatpush.msrb.mxu0 %v178_v61  ;;  %v330_v61 = vld [vmem:[#allocation2 + $0x10] sm:$0xff] }
  0x15   :  { %v185_v6 = vsub.f32 %v1373_v16, %v184_v62  ;;  %v49_v7 = vadd.f32 %v48_v55, %v47_v44  ;;  %v83_v8 = vrot.slane %v82_v56, 1  ;;  %v90_v9 = vrot.slane %v89_v57, 1 }
  0x16   :  { %v95_v10 = vmul.f32 %v1283_v37, %v94_v0  ;;  %v56_v11 = vadd.f32 %v55_v59, %v54_v48  ;;  %v63_v12 = vadd.f32 %v62_v60, %v61_v49  ;;  %v180_v13 = vand.u32 4294901760, %v179_v5  ;;  %265 = vmatpush.msrb.mxu0 %v184_v62  ;;  %v331_v60 = vld [vmem:[#allocation2 + $0x18] sm:$0xff] }
  0x17   :  { %v186_v14 = vand.u32 4294901760, %v185_v6  ;;  %v70_v17 = vadd.f32 %v69_v63, %v68_v50  ;;  %v77_v19 = vadd.f32 %v76_v2, %v75_v54  ;;  %v84_v20 = vadd.f32 %v83_v8, %v82_v56 }
  0x18   :  { %v96_v18 = vadd.f32 %v1283_v37, %v95_v10  ;;  %181 = vmatpush.msra.mxu1 %v180_v13  ;;  %v91_v21 = vadd.f32 %v90_v9, %v89_v57  ;;  %vm121_vm3 = vcmask 1042434   ;;  %vm123_vm4 = vcmask 1043459  }
  0x19   :  { %vm125_vm5 = vcmask 1044484   ;;  %vm127_vm6 = vcmask 1045509   ;;  %vm129_vm7 = vcmask 1046534   ;;  %vm131_vm8 = vcmask 1047559  }
  0x1a   :  { %v98_v15 = vsel %vm97_vm1, %v1283_v37, %v96_v18  ;;  %187 = vmatpush.msra.mxu1 %v186_v14  ;;  %v110_v41 = vperm.slane %v1427_v40, 0  ;;  %v371_v62 = vand.u32 4294901760, %v331_v60  ;;  %v373_v63 = vand.u32 4294901760, %v330_v61 }
  0x1b   :  { %v1393_v16 = vmul.f32 %v98_v15, %v42_v1  ;;  %v1395_v22 = vmul.f32 %v98_v15, %v49_v7  ;;  %v1397_v23 = vmul.f32 %v98_v15, %v56_v11  ;;  %v1399_v24 = vmul.f32 %v98_v15, %v63_v12 }
  0x1c   :  { %v1401_v25 = vmul.f32 %v98_v15, %v70_v17  ;;  %286 = vmatpush.msrb.mxu1 %v1348_v3  ;;  %v1404_v26 = vmul.f32 %v98_v15, %v77_v19  ;;  %v1409_v28 = vmul.f32 %v98_v15, %v84_v20  ;;  %v1414_v30 = vmul.f32 %v98_v15, %v91_v21 }
  0x1d   :  { %v120_v27 = vsel %vm119_vm2, %v1395_v22, %v1393_v16  ;;  %v399_v0 = vsub.f32 %v331_v60, %v371_v62  ;;  %v405_v1 = vsub.f32 %v330_v61, %v373_v63  ;;  %372 = vmatpush.msrb.mxu2 %v371_v62 }
  0x1e   :  { %v122_v29 = vsel %vm121_vm3, %v1397_v23, %v120_v27  ;;  %288 = vmatpush.msrb.mxu1 %v1350_v4 }
  0x1f   :  { %v124_v3 = vsel %vm123_vm4, %v1399_v24, %v122_v29  ;;  %v400_v2 = vand.u32 4294901760, %v399_v0  ;;  %v406_v5 = vand.u32 4294901760, %v405_v1  ;;  %374 = vmatpush.msrb.mxu2 %v373_v63 }
  0x20   :  { %v126_v31 = vsel %vm125_vm5, %v1401_v25, %v124_v3 }
  0x21   :  { %v128_v32 = vsel %vm127_vm6, %v1404_v26, %v126_v31  ;;  %v401_v6 = vsub.f32 %v399_v0, %v400_v2  ;;  %v407_v7 = vsub.f32 %v405_v1, %v406_v5 }
  0x22   :  { %v130_v33 = vsel %vm129_vm7, %v1409_v28, %v128_v32 }
  0x23   :  { %v132_v34 = vsel %vm131_vm8, %v1414_v30, %v130_v33  ;;  %v402_v8 = vand.u32 4294901760, %v401_v6  ;;  %v408_v9 = vand.u32 4294901760, %v407_v7  ;;  %v545_v6 = vld [vmem:[#allocation2 + $0x70] sm:$0xff] }
  0x24   :  { %v133_v4 = vsel %vm35_vm0, %v132_v34, 0 }
  0x25   :  { %v153_v35 = vand.u32 4294901760, %v133_v4  ;;  %403 = vmatpush.msrb.mxu3 %v402_v8 }
  0x27   :  { %v154_v36 = vsub.f32 %v133_v4, %v153_v35  ;;  %189 = vmatmul.f32.vlgmr.msra.gmra.mxu1 %v153_v35  ;;  %409 = vmatpush.msrb.mxu3 %v408_v9 }
  0x28   :  { %456 = vmatpush.msra.mxu1 %v371_v62 }
  0x29   :  { %215 = vmatmul.f32.vlgmr.msra.gmra.mxu2 %v154_v36  ;;  %v155_v37 = vand.u32 4294901760, %v154_v36 }
  0x2a   :  { %458 = vmatpush.msra.mxu1 %v373_v63  ;;  %483 = vmatpush.msra.mxu2 %v400_v2 }
  0x2b   :  { %v156_v38 = vsub.f32 %v154_v36, %v155_v37  ;;  %240 = vmatmul.f32.vlgmr.msra.gmra.mxu3 %v155_v37 }
  0x2c   :  { %487 = vmatpush.msra.mxu2 %v406_v5  ;;  %508 = vmatpush.msra.mxu3 %v371_v62  ;;  %v546_v62 = vld [vmem:[#allocation2 + $0x78] sm:$0xff] }
  0x2d   :  { %v157_v39 = vand.u32 4294901760, %v156_v38  ;;  %v1487_v5 = vand.u32 4294901760, %v546_v62 }
  0x2e   :  { %510 = vmatpush.msra.mxu3 %v373_v63 }
  0x2f   :  { %158 = vmatmul.f32.vlgmr.msra.gmra.mxu0 %v157_v39  ;;  %290 = vmatmul.f32.vlgmr.msrb.gmra.mxu1 %v153_v35 }
  0x30   :  { %431 = vmatpush.msra.mxu0 %v399_v0 }
  0x32   :  { %434 = vmatpush.msra.mxu0 %v405_v1 }
  0x37   :  { %267 = vmatmul.f32.vlgmr.msrb.gmra.mxu0 %v153_v35 }
  0xa4   :  { %v190_v42 = vpop.f32.mrf.mxu1 }
  0xac   :  { %v159_v43 = vpop.f32.mrf.mxu0  ;;  %v216_v45 = vpop.f32.mrf.mxu2 }
  0xad   :  { %v160_v44 = vadd.f32 %v159_v43, %v110_v41  ;;  %v291_v51 = vpop.f32.mrf.mxu1 }
  0xae   :  { %v241_v47 = vpop.f32.mrf.mxu3 }
  0xaf   :  { %v191_v46 = vadd.f32 %v190_v42, %v160_v44 }
  0xb1   :  { %v217_v48 = vadd.f32 %v216_v45, %v191_v46 }
  0xb3   :  { %v242_v49 = vadd.f32 %v241_v47, %v217_v48  ;;  %v550_v48 = vld [vmem:[#allocation2 + $0x98] sm:$0xff] }
  0xb4   :  { %v268_v50 = vpop.f32.mrf.mxu0 }
  0xb5   :  { %v269_v52 = vadd.f32 %v268_v50, %v242_v49  ;;  %v1448_v49 = vand.u32 4294901760, %v550_v48  ;;  %v549_v50 = vld [vmem:[#allocation2 + $0x90] sm:$0xff] }
  0xb7   :  { %v292_v53 = vadd.f32 %v291_v51, %v269_v52  ;;  %v1451_v51 = vsub.f32 %v550_v48, %v1448_v49  ;;  %v1453_v52 = vand.u32 4294901760, %v549_v50  ;;  %553 = vmatpush.msrb.mxu0 %v1448_v49 }
  0xb9   :  { %v294_v54 = vsel %vm35_vm0, %v292_v53, -inf  ;;  %555 = vmatpush.msrb.mxu0 %v1453_v52 }
  0xba   :  { %295 = vmax.xlane.f32.xlu0 %v294_v54  ;;  %v595_v54 = vand.u32 4294901760, %v1451_v51 }
 0x12d   :  { %v296_v55 = vpop.xlane.xlu0 %295 }
 0x12e   :  { %v297_v56 = vsub.f32 %v292_v53, %v296_v55  ;;  %v548_v53 = vld [vmem:[#allocation2 + $0x88] sm:$0xff]  ;;  %v1459_v55 = vsub.f32 %v549_v50, %v1453_v52 }
 0x130   :  { %v298_v57 = vmul.f32 1.442695, %v297_v56  ;;  %v1461_v56 = vand.u32 4294901760, %v548_v53 }
 0x132   :  { %1284 = vpow2.f32 %v298_v57  ;;  %v547_v57 = vld [vmem:[#allocation2 + $0x80] sm:$0xff]  ;;  %v1471_v60 = vsub.f32 %v548_v53, %v1461_v56  ;;  %557 = vmatpush.msrb.mxu0 %v1461_v56 }
 0x133   :  { %v1473_v61 = vand.u32 4294901760, %v547_v57 }
 0x134   :  { %v607_v1 = vand.u32 4294901760, %v1471_v60 }
 0x135   :  { %v1483_v2 = vsub.f32 %v547_v57, %v1473_v61  ;;  %559 = vmatpush.msrb.mxu0 %v1473_v61 }
 0x136   :  { %v608_v8 = vsub.f32 %v1471_v60, %v607_v1 }
 0x137   :  { %v613_v9 = vand.u32 4294901760, %v1483_v2  ;;  %561 = vmatpush.msrb.mxu0 %v1487_v5 }
 0x138   :  { %v1285_v58 = vpop.eup %1284 }
 0x139   :  { %v300_v59 = vsel %vm35_vm0, %v1285_v58, 0.0 }
 0x13a   :  { %301 = vadd.xlane.f32.xlu0 %v300_v59  ;;  %v601_v59 = vand.u32 4294901760, %v1459_v55 }
 0x13c   :  { %v602_v0 = vsub.f32 %v1459_v55, %v601_v59 }
 0x13e   :  { %v603_v7 = vand.u32 4294901760, %v602_v0 }
 0x1ad   :  { %v302_v10 = vpop.xlane.xlu0 %301 }
 0x1ae   :  { %1286 = vrcp.f32 %v302_v10  ;;  %v1494_v10 = vand.u32 4294901760, %v545_v6 }
 0x1b0   :  { %563 = vmatpush.msrb.mxu0 %v1494_v10 }
 0x1b4   :  { %v1287_v11 = vpop.eup %1286 }
 0x1b5   :  { %v304_v12 = vmul.f32 %v1287_v11, %v1285_v58  ;;  %v596_v58 = vsub.f32 %v1451_v51, %v595_v54  ;;  %v1498_v11 = vsub.f32 %v546_v62, %v1487_v5  ;;  %v537_v62 = vld [vmem:[#allocation2 + $0x30] sm:$0xff] }
 0x1b7   :  { %v305_v13 = vadd.f32 1.0, %v304_v12  ;;  %v597_v63 = vand.u32 4294901760, %v596_v58  ;;  %v544_v12 = vld [vmem:[#allocation2 + $0x68] sm:$0xff] }
 0x1b9   :  { %v307_v14 = vrot.slane %v305_v13, 1  ;;  %v308_v17 = vrot.slane %v305_v13, 2  ;;  %v309_v18 = vrot.slane %v305_v13, 3  ;;  %v310_v19 = vrot.slane %v305_v13, 4  ;;  %598 = vmatpush.msrb.mxu1 %v597_v63 }
 0x1ba   :  { %v311_v20 = vrot.slane %v305_v13, 5  ;;  %v312_v21 = vrot.slane %v305_v13, 6  ;;  %v313_v15 = vrot.slane %v305_v13, 7  ;;  %v322_v32 = vmul.f32 %v305_v13, %v1393_v16 }
 0x1bb   :  { %v323_v27 = vmul.f32 %v307_v14, %v1395_v22  ;;  %v324_v29 = vmul.f32 %v308_v17, %v1397_v23  ;;  %v325_v3 = vmul.f32 %v309_v18, %v1399_v24  ;;  %v326_v31 = vmul.f32 %v310_v19, %v1401_v25  ;;  %604 = vmatpush.msrb.mxu1 %v603_v7 }
 0x1bc   :  { %v327_v33 = vmul.f32 %v311_v20, %v1404_v26  ;;  %v328_v35 = vmul.f32 %v312_v21, %v1409_v28  ;;  %v329_v36 = vmul.f32 %v313_v15, %v1414_v30  ;;  %v609_v13 = vand.u32 4294901760, %v608_v8  ;;  %v543_v20 = vld [vmem:[#allocation2 + $0x60] sm:$0xff] }
 0x1bd   :  { %v341_v34 = vrot.slane %v323_v27, 7  ;;  %v343_v4 = vrot.slane %v324_v29, 6  ;;  %v345_v38 = vrot.slane %v325_v3, 5  ;;  %v347_v23 = vrot.slane %v326_v31, 4  ;;  %v542_v31 = vld [vmem:[#allocation2 + $0x58] sm:$0xff] }
 0x1be   :  { %v349_v39 = vrot.slane %v327_v33, 3  ;;  %v351_v16 = vrot.slane %v328_v35, 2  ;;  %v353_v41 = vrot.slane %v329_v36, 1  ;;  %v614_v14 = vsub.f32 %v1483_v2, %v613_v9  ;;  %610 = vmatpush.msrb.mxu1 %v609_v13  ;;  %v541_v36 = vld [vmem:[#allocation2 + $0x50] sm:$0xff] }
 0x1bf   :  { %v342_v37 = vsel %vm119_vm2, %v341_v34, %v322_v32  ;;  %v1506_v17 = vsub.f32 %v545_v6, %v1494_v10  ;;  %v619_v18 = vand.u32 4294901760, %v1498_v11  ;;  %v1509_v19 = vand.u32 4294901760, %v544_v12 }
 0x1c0   :  { %v344_v22 = vsel %vm121_vm3, %v343_v4, %v342_v37  ;;  %v615_v21 = vand.u32 4294901760, %v614_v14  ;;  %v1514_v27 = vand.u32 4294901760, %v543_v20  ;;  %v1531_v34 = vand.u32 4294901760, %v542_v31 }
 0x1c1   :  { %v346_v24 = vsel %vm123_vm4, %v345_v38, %v344_v22  ;;  %v625_v15 = vand.u32 4294901760, %v1506_v17  ;;  %v620_v29 = vsub.f32 %v1498_v11, %v619_v18  ;;  %v1521_v3 = vsub.f32 %v544_v12, %v1509_v19  ;;  %565 = vmatpush.msrb.mxu0 %v1509_v19  ;;  %v536_v12 = vld [vmem:[#allocation2 + $0x28] sm:$0xff] }
 0x1c2   :  { %v348_v25 = vsel %vm125_vm5, %v347_v23, %v346_v24  ;;  %616 = vmatpush.msrb.mxu1 %v615_v21  ;;  %v1529_v33 = vsub.f32 %v543_v20, %v1514_v27  ;;  %v1539_v22 = vsub.f32 %v542_v31, %v1531_v34  ;;  %v1541_v23 = vand.u32 4294901760, %v541_v36  ;;  %v535_v31 = vld [vmem:[#allocation2 + $0x20] sm:$0xff] }
 0x1c3   :  { %v350_v26 = vsel %vm127_vm6, %v349_v39, %v348_v25  ;;  %v626_v32 = vsub.f32 %v1506_v17, %v625_v15  ;;  %v621_v4 = vand.u32 4294901760, %v620_v29  ;;  %v631_v35 = vand.u32 4294901760, %v1521_v3  ;;  %567 = vmatpush.msrb.mxu0 %v1514_v27  ;;  %v540_v39 = vld [vmem:[#allocation2 + $0x48] sm:$0xff] }
 0x1c4   :  { %v352_v42 = vsel %vm129_vm7, %v351_v16, %v350_v26  ;;  %v637_v38 = vand.u32 4294901760, %v1529_v33  ;;  %v643_v16 = vand.u32 4294901760, %v1539_v22  ;;  %v1553_v26 = vsub.f32 %v541_v36, %v1541_v23 }
 0x1c5   :  { %v354_v28 = vsel %vm131_vm8, %v353_v41, %v352_v42  ;;  %v627_v37 = vand.u32 4294901760, %v626_v32  ;;  %622 = vmatpush.msrb.mxu1 %v621_v4  ;;  %v632_v24 = vsub.f32 %v1521_v3, %v631_v35  ;;  %569 = vmatpush.msrb.mxu0 %v1531_v34  ;;  %v1555_v41 = vand.u32 4294901760, %v540_v39 }
 0x1c6   :  { %v355_v30 = vsel %vm35_vm0, %v354_v28, 0  ;;  %v638_v25 = vsub.f32 %v1529_v33, %v637_v38  ;;  %v539_v28 = vld [vmem:[#allocation2 + $0x40] sm:$0xff]  ;;  %v1590_v7 = vand.u32 4294901760, %v537_v62  ;;  %v1600_v21 = vand.u32 4294901760, %v536_v12 }
 0x1c7   :  { %v375_v43 = vand.u32 4294901760, %v355_v30  ;;  %628 = vmatpush.msrb.mxu1 %v627_v37  ;;  %v633_v42 = vand.u32 4294901760, %v632_v24  ;;  %571 = vmatpush.msrb.mxu0 %v1541_v23  ;;  %v1615_v37 = vand.u32 4294901760, %v535_v31 }
 0x1c8   :  { %v1598_v20 = vsub.f32 %v537_v62, %v1590_v7  ;;  %v1613_v36 = vsub.f32 %v536_v12, %v1600_v21 }
 0x1c9   :  { %411 = vmatmul.f32.vlgmr.msrb.gmra.mxu3 %v375_v43  ;;  %v376_v44 = vsub.f32 %v355_v30, %v375_v43  ;;  %v639_v30 = vand.u32 4294901760, %v638_v25  ;;  %634 = vmatpush.msrb.mxu1 %v633_v42 }
 0x1ca   :  { %749 = vmatpush.msrb.mxu3 %v1448_v49  ;;  %573 = vmatpush.msrb.mxu0 %v1555_v41  ;;  %v673_v4 = vand.u32 4294901760, %v1598_v20  ;;  %v679_v42 = vand.u32 4294901760, %v1613_v36 }
 0x1cb   :  { %437 = vmatmul.f32.vlgmr.msra.gmra.mxu0 %v376_v44  ;;  %v377_v45 = vand.u32 4294901760, %v376_v44  ;;  %640 = vmatpush.msrb.mxu1 %v639_v30 }
 0x1cc   :  { %751 = vmatpush.msrb.mxu3 %v1453_v52  ;;  %v674_v25 = vsub.f32 %v1598_v20, %v673_v4 }
 0x1cd   :  { %462 = vmatmul.f32.vlgmr.msra.gmra.mxu1 %v377_v45  ;;  %v378_v46 = vsub.f32 %v376_v44, %v377_v45  ;;  %v649_v44 = vand.u32 4294901760, %v1553_v26  ;;  %v1565_v45 = vsub.f32 %v540_v39, %v1555_v41 }
 0x1ce   :  { %753 = vmatpush.msrb.mxu3 %v1461_v56  ;;  %v675_v30 = vand.u32 4294901760, %v674_v25 }
 0x1cf   :  { %v379_v47 = vand.u32 4294901760, %v378_v46  ;;  %v1569_v46 = vand.u32 4294901760, %v539_v28  ;;  %v650_v50 = vsub.f32 %v1553_v26, %v649_v44  ;;  %v655_v53 = vand.u32 4294901760, %v1565_v45 }
 0x1d0   :  { %755 = vmatpush.msrb.mxu3 %v1473_v61 }
 0x1d1   :  { %380 = vmatmul.f32.vlgmr.msrb.gmra.mxu2 %v379_v47  ;;  %512 = vmatmul.f32.vlgmr.msra.gmra.mxu3 %v375_v43  ;;  %v538_v47 = vld [vmem:[#allocation2 + $0x38] sm:$0xff]  ;;  %v1581_v58 = vsub.f32 %v539_v28, %v1569_v46  ;;  %v651_v63 = vand.u32 4294901760, %v650_v50  ;;  %v656_v0 = vsub.f32 %v1565_v45, %v655_v53  ;;  %v684_v28 = vsub.f32 %v535_v31, %v1615_v37 }
 0x1d2   :  { %696 = vmatpush.msrb.mxu2 %v1451_v51  ;;  %757 = vmatpush.msrb.mxu3 %v1487_v5  ;;  %v1576_v57 = vand.u32 4294901760, %v538_v47 }
 0x1d3   :  { %575 = vmatpush.msrb.mxu0 %v1569_v46  ;;  %v661_v8 = vand.u32 4294901760, %v1581_v58  ;;  %v657_v13 = vand.u32 4294901760, %v656_v0 }
 0x1d4   :  { %699 = vmatpush.msrb.mxu2 %v1459_v55  ;;  %759 = vmatpush.msrb.mxu3 %v1494_v10  ;;  %v1588_v6 = vsub.f32 %v538_v47, %v1576_v57  ;;  %v685_v47 = vand.u32 4294901760, %v684_v28 }
 0x1d5   :  { %577 = vmatpush.msrb.mxu0 %v1576_v57  ;;  %v662_v29 = vsub.f32 %v1581_v58, %v661_v8 }
 0x1d6   :  { %702 = vmatpush.msrb.mxu2 %v1471_v60  ;;  %761 = vmatpush.msrb.mxu3 %v1509_v19  ;;  %v667_v14 = vand.u32 4294901760, %v1588_v6  ;;  %v686_v50 = vsub.f32 %v684_v28, %v685_v47 }
 0x1d7   :  { %579 = vmatpush.msrb.mxu0 %v1590_v7  ;;  %v663_v24 = vand.u32 4294901760, %v662_v29 }
 0x1d8   :  { %705 = vmatpush.msrb.mxu2 %v1483_v2  ;;  %763 = vmatpush.msrb.mxu3 %v1514_v27  ;;  %v668_v32 = vsub.f32 %v1588_v6, %v667_v14  ;;  %v687_v62 = vand.u32 4294901760, %v686_v50 }
 0x1d9   :  { %489 = vmatmul.f32.vlgmr.msra.gmra.mxu2 %v375_v43  ;;  %v644_v43 = vsub.f32 %v1539_v22, %v643_v16  ;;  %581 = vmatpush.msrb.mxu0 %v1600_v21 }
 0x1da   :  { %708 = vmatpush.msrb.mxu2 %v1498_v11  ;;  %765 = vmatpush.msrb.mxu3 %v1531_v34  ;;  %v669_v39 = vand.u32 4294901760, %v668_v32  ;;  %v923_v32 = vld [vmem:[#allocation2 + $0xf8] sm:$0xff] }
 0x1db   :  { %v645_v48 = vand.u32 4294901760, %v644_v43  ;;  %583 = vmatpush.msrb.mxu0 %v1615_v37  ;;  %v680_v43 = vsub.f32 %v1613_v36, %v679_v42 }
 0x1dc   :  { %711 = vmatpush.msrb.mxu2 %v1506_v17  ;;  %767 = vmatpush.msrb.mxu3 %v1541_v23 }
 0x1dd   :  { %646 = vmatpush.msrb.mxu1 %v645_v48  ;;  %790 = vmatpush.msra.mxu0 %v595_v54  ;;  %v681_v48 = vand.u32 4294901760, %v680_v43 }
 0x1de   :  { %714 = vmatpush.msrb.mxu2 %v1521_v3  ;;  %769 = vmatpush.msrb.mxu3 %v1555_v41 }
 0x1df   :  { %652 = vmatpush.msrb.mxu1 %v651_v63  ;;  %794 = vmatpush.msra.mxu0 %v601_v59 }
 0x1e0   :  { %717 = vmatpush.msrb.mxu2 %v1529_v33  ;;  %771 = vmatpush.msrb.mxu3 %v1569_v46 }
 0x1e1   :  { %658 = vmatpush.msrb.mxu1 %v657_v13  ;;  %798 = vmatpush.msra.mxu0 %v607_v1 }
 0x1e2   :  { %720 = vmatpush.msrb.mxu2 %v1539_v22  ;;  %773 = vmatpush.msrb.mxu3 %v1576_v57 }
 0x1e3   :  { %664 = vmatpush.msrb.mxu1 %v663_v24  ;;  %802 = vmatpush.msra.mxu0 %v613_v9  ;;  %v922_v24 = vld [vmem:[#allocation2 + $0xf0] sm:$0xff] }
 0x1e4   :  { %723 = vmatpush.msrb.mxu2 %v1553_v26  ;;  %775 = vmatpush.msrb.mxu3 %v1590_v7 }
 0x1e5   :  { %670 = vmatpush.msrb.mxu1 %v669_v39  ;;  %806 = vmatpush.msra.mxu0 %v619_v18  ;;  %v927_v18 = vld [vmem:[#allocation2 + $0x118] sm:$0xff] }
 0x1e6   :  { %726 = vmatpush.msrb.mxu2 %v1565_v45  ;;  %777 = vmatpush.msrb.mxu3 %v1600_v21 }
 0x1e7   :  { %676 = vmatpush.msrb.mxu1 %v675_v30  ;;  %810 = vmatpush.msra.mxu0 %v625_v15  ;;  %v1672_v15 = vand.u32 4294901760, %v927_v18  ;;  %v921_v30 = vld [vmem:[#allocation2 + $0xe8] sm:$0xff] }
 0x1e8   :  { %729 = vmatpush.msrb.mxu2 %v1581_v58  ;;  %779 = vmatpush.msrb.mxu3 %v1615_v37 }
 0x1e9   :  { %682 = vmatpush.msrb.mxu1 %v681_v48  ;;  %814 = vmatpush.msra.mxu0 %v631_v35  ;;  %v1677_v33 = vsub.f32 %v927_v18, %v1672_v15 }
 0x1ea   :  { %732 = vmatpush.msrb.mxu2 %v1588_v6 }
 0x1eb   :  { %688 = vmatpush.msrb.mxu1 %v687_v62  ;;  %818 = vmatpush.msra.mxu0 %v637_v38  ;;  %v972_v38 = vand.u32 4294901760, %v1677_v33  ;;  %v1735_v62 = vand.u32 4294901760, %v921_v30 }
 0x1ec   :  { %735 = vmatpush.msrb.mxu2 %v1598_v20 }
 0x1ed   :  { %857 = vmatpush.msra.mxu1 %v1448_v49  ;;  %v332_v49 = vperm.slane %v1427_v40, 1  ;;  %822 = vmatpush.msra.mxu0 %v643_v16  ;;  %v973_v26 = vsub.f32 %v1677_v33, %v972_v38 }
 0x1ee   :  { %738 = vmatpush.msrb.mxu2 %v1613_v36 }
 0x1ef   :  { %859 = vmatpush.msra.mxu1 %v1453_v52  ;;  %826 = vmatpush.msra.mxu0 %v649_v44 }
 0x1f0   :  { %741 = vmatpush.msrb.mxu2 %v684_v28  ;;  %v1721_v28 = vand.u32 4294901760, %v922_v24 }
 0x1f1   :  { %861 = vmatpush.msra.mxu1 %v1461_v56  ;;  %830 = vmatpush.msra.mxu0 %v655_v53 }
 0x1f2   :  { %930 = vmatpush.msra.mxu2 %v1672_v15  ;;  %v1731_v50 = vsub.f32 %v922_v24, %v1721_v28 }
 0x1f3   :  { %863 = vmatpush.msra.mxu1 %v1473_v61  ;;  %834 = vmatpush.msra.mxu0 %v661_v8 }
 0x1f5   :  { %865 = vmatpush.msra.mxu1 %v1487_v5  ;;  %838 = vmatpush.msra.mxu0 %v667_v14  ;;  %v925_v14 = vld [vmem:[#allocation2 + $0x108] sm:$0xff] }
 0x1f6   :  { %v1696_v20 = vand.u32 4294901760, %v925_v14 }
 0x1f7   :  { %867 = vmatpush.msra.mxu1 %v1494_v10  ;;  %842 = vmatpush.msra.mxu0 %v673_v4 }
 0x1f8   :  { %v1699_v29 = vsub.f32 %v925_v14, %v1696_v20 }
 0x1f9   :  { %869 = vmatpush.msra.mxu1 %v1509_v19  ;;  %846 = vmatpush.msra.mxu0 %v679_v42  ;;  %v926_v19 = vld [vmem:[#allocation2 + $0x110] sm:$0xff] }
 0x1fa   :  { %v984_v4 = vand.u32 4294901760, %v1699_v29 }
 0x1fb   :  { %871 = vmatpush.msra.mxu1 %v1514_v27  ;;  %850 = vmatpush.msra.mxu0 %v685_v47  ;;  %v1674_v27 = vand.u32 4294901760, %v926_v19 }
 0x1fc   :  { %v985_v39 = vsub.f32 %v1699_v29, %v984_v4 }
 0x1fd   :  { %873 = vmatpush.msra.mxu1 %v1531_v34  ;;  %v1680_v34 = vsub.f32 %v926_v19, %v1674_v27  ;;  %932 = vmatpush.msra.mxu2 %v1674_v27 }
 0x1fe   :  { %v986_v43 = vand.u32 4294901760, %v985_v39 }
 0x1ff   :  { %875 = vmatpush.msra.mxu1 %v1541_v23  ;;  %v978_v22 = vand.u32 4294901760, %v1680_v34  ;;  %934 = vmatpush.msra.mxu2 %v1696_v20 }
 0x201   :  { %877 = vmatpush.msra.mxu1 %v1555_v41  ;;  %v979_v41 = vsub.f32 %v1680_v34, %v978_v22 }
 0x203   :  { %879 = vmatpush.msra.mxu1 %v1569_v46  ;;  %v974_v46 = vand.u32 4294901760, %v973_v26  ;;  %v980_v53 = vand.u32 4294901760, %v979_v41 }
 0x205   :  { %881 = vmatpush.msra.mxu1 %v1576_v57  ;;  %975 = vmatpush.msra.mxu3 %v974_v46 }
 0x207   :  { %883 = vmatpush.msra.mxu1 %v1590_v7  ;;  %981 = vmatpush.msra.mxu3 %v980_v53 }
 0x209   :  { %885 = vmatpush.msra.mxu1 %v1600_v21  ;;  %v924_v21 = vld [vmem:[#allocation2 + $0x100] sm:$0xff]  ;;  %987 = vmatpush.msra.mxu3 %v986_v43 }
 0x20a   :  { %v1701_v31 = vand.u32 4294901760, %v924_v21 }
 0x20b   :  { %887 = vmatpush.msra.mxu1 %v1615_v37  ;;  %v1709_v37 = vand.u32 4294901760, %v923_v32 }
 0x20c   :  { %v1707_v36 = vsub.f32 %v924_v21, %v1701_v31  ;;  %936 = vmatpush.msra.mxu2 %v1701_v31 }
 0x20d   :  { %v1719_v42 = vsub.f32 %v923_v32, %v1709_v37 }
 0x20e   :  { %v990_v25 = vand.u32 4294901760, %v1707_v36  ;;  %938 = vmatpush.msra.mxu2 %v1709_v37 }
 0x20f   :  { %v996_v48 = vand.u32 4294901760, %v1719_v42 }
 0x210   :  { %v991_v47 = vsub.f32 %v1707_v36, %v990_v25  ;;  %940 = vmatpush.msra.mxu2 %v1721_v28 }
 0x212   :  { %942 = vmatpush.msra.mxu2 %v1735_v62 }
 0x248   :  { %v438_v56 = vpop.f32.mrf.mxu0 }
 0x24a   :  { %v463_v60 = vpop.f32.mrf.mxu1 }
 0x24c   :  { %v412_v51 = vpop.f32.mrf.mxu3 }
 0x254   :  { %v381_v52 = vpop.f32.mrf.mxu2  ;;  %v513_v5 = vpop.f32.mrf.mxu3 }
 0x255   :  { %v382_v54 = vadd.f32 %v381_v52, %v332_v49  ;;  %v920_v49 = vld [vmem:[#allocation2 + $0xe0] sm:$0xff]  ;;  %v997_v52 = vsub.f32 %v1719_v42, %v996_v48 }
 0x257   :  { %v413_v55 = vadd.f32 %v412_v51, %v382_v54  ;;  %v992_v51 = vand.u32 4294901760, %v991_v47  ;;  %v1002_v54 = vand.u32 4294901760, %v1731_v50 }
 0x259   :  { %v439_v59 = vadd.f32 %v438_v56, %v413_v55  ;;  %v1742_v55 = vand.u32 4294901760, %v920_v49  ;;  %v1746_v56 = vsub.f32 %v921_v30, %v1735_v62  ;;  %993 = vmatpush.msra.mxu3 %v992_v51  ;;  %v913_v30 = vld [vmem:[#allocation2 + $0xa8] sm:$0xff] }
 0x25a   :  { %v1824_v51 = vand.u32 4294901760, %v913_v30 }
 0x25b   :  { %v464_v61 = vadd.f32 %v463_v60, %v439_v59  ;;  %v919_v59 = vld [vmem:[#allocation2 + $0xd8] sm:$0xff]  ;;  %v998_v60 = vand.u32 4294901760, %v997_v52  ;;  %944 = vmatpush.msra.mxu2 %v1742_v55 }
 0x25c   :  { %v490_v1 = vpop.f32.mrf.mxu2 }
 0x25d   :  { %v491_v2 = vadd.f32 %v490_v1, %v464_v61  ;;  %v1003_v61 = vsub.f32 %v1731_v50, %v1002_v54  ;;  %v1754_v1 = vsub.f32 %v920_v49, %v1742_v55  ;;  %999 = vmatpush.msra.mxu3 %v998_v60 }
 0x25f   :  { %v514_v9 = vadd.f32 %v513_v5, %v491_v2  ;;  %v1756_v2 = vand.u32 4294901760, %v919_v59  ;;  %v1008_v5 = vand.u32 4294901760, %v1746_v56 }
 0x261   :  { %v1276_v10 = vmul.f32 -1.442695, %v514_v9  ;;  %v918_v9 = vld [vmem:[#allocation2 + $0xd0] sm:$0xff]  ;;  %v1009_v19 = vsub.f32 %v1746_v56, %v1008_v5  ;;  %946 = vmatpush.msra.mxu2 %v1756_v2 }
 0x262   :  { %v1765_v18 = vand.u32 4294901760, %v918_v9 }
 0x263   :  { %1288 = vpow2.f32 %v1276_v10  ;;  %v1004_v10 = vand.u32 4294901760, %v1003_v61  ;;  %v1010_v41 = vand.u32 4294901760, %v1009_v19 }
 0x264   :  { %948 = vmatpush.msra.mxu2 %v1765_v18 }
 0x265   :  { %1005 = vmatpush.msra.mxu3 %v1004_v10 }
 0x267   :  { %1011 = vmatpush.msra.mxu3 %v1010_v41 }
 0x269   :  { %v1289_v11 = vpop.eup %1288 }
 0x26a   :  { %v519_v17 = vadd.f32 1.0, %v1289_v11  ;;  %v1014_v11 = vand.u32 4294901760, %v1754_v1 }
 0x26c   :  { %1290 = vrcp.f32 %v519_v17  ;;  %v531_v16 = vand.u32 2147483648, %v519_v17  ;;  %v529_v45 = vand.u32 2147483647, %v519_v17  ;;  %vm525_vm10 = vweird.f32 %v519_v17 }
 0x26e   :  { %v532_v58 = vor.u32 1.1754944e-38, %v531_v16  ;;  %vm530_vm12 = vcmp.eq.f32.partialorder %v529_v45, 8.507059e+37  ;;  %v1778_v16 = vsub.f32 %v918_v9, %v1765_v18  ;;  %v1837_v9 = vsub.f32 %v913_v30, %v1824_v51 }
 0x270   :  { %v1026_v53 = vand.u32 4294901760, %v1778_v16  ;;  %v1056_v41 = vand.u32 4294901760, %v1837_v9 }
 0x272   :  { %v1291_v3 = vpop.eup %1290 }
 0x273   :  { %v521_v35 = vmul.f32 %v1291_v3, %v519_v17  ;;  %vm526_vm9 = vweird.f32 %v1291_v3  ;;  %v1763_v17 = vsub.f32 %v919_v59, %v1756_v2  ;;  %v912_v59 = vld [vmem:[#allocation2 + $0xa0] sm:$0xff] }
 0x274   :  { %vm527_vm11 = vmor %vm525_vm10, %vm526_vm9  ;;  %v1839_v10 = vand.u32 4294901760, %v912_v59 }
 0x275   :  { %v522_v23 = vsub.f32 1.0, %v521_v35  ;;  %v1015_v35 = vsub.f32 %v1754_v1, %v1014_v11 }
 0x277   :  { %v523_v44 = vmul.f32 %v1291_v3, %v522_v23  ;;  %v1020_v23 = vand.u32 4294901760, %v1763_v17  ;;  %v1016_v45 = vand.u32 4294901760, %v1015_v35 }
 0x279   :  { %v524_v57 = vadd.f32 %v1291_v3, %v523_v44  ;;  %v916_v44 = vld [vmem:[#allocation2 + $0xc0] sm:$0xff]  ;;  %v1021_v46 = vsub.f32 %v1763_v17, %v1020_v23  ;;  %1017 = vmatpush.msra.mxu3 %v1016_v45 }
 0x27b   :  { %v528_v63 = vsel %vm527_vm11, %v1291_v3, %v524_v57  ;;  %v917_v3 = vld [vmem:[#allocation2 + $0xc8] sm:$0xff] }
 0x27c   :  { %v533_v0 = vsel %vm530_vm12, %v532_v58, %v528_v63  ;;  %v1780_v26 = vand.u32 4294901760, %v917_v3  ;;  %v1793_v58 = vand.u32 4294901760, %v916_v44  ;;  %v915_v63 = vld [vmem:[#allocation2 + $0xb8] sm:$0xff] }
 0x27d   :  { %v584_v6 = vand.u32 4294901760, %v533_v0 }
 0x27e   :  { %v1790_v57 = vsub.f32 %v917_v3, %v1780_v26  ;;  %950 = vmatpush.msra.mxu2 %v1780_v26 }
 0x27f   :  { %690 = vmatmul.f32.vlgmr.msrb.gmra.mxu1 %v584_v6  ;;  %v585_v7 = vsub.f32 %v533_v0, %v584_v6  ;;  %v1022_v0 = vand.u32 4294901760, %v1021_v46  ;;  %v1057_v46 = vsub.f32 %v1837_v9, %v1056_v41 }
 0x280   :  { %1126 = vmatpush.msrb.mxu1 %v1672_v15  ;;  %952 = vmatpush.msra.mxu2 %v1793_v58 }
 0x281   :  { %744 = vmatmul.f32.vlgmr.msrb.gmra.mxu2 %v585_v7  ;;  %v586_v8 = vand.u32 4294901760, %v585_v7  ;;  %1023 = vmatpush.msra.mxu3 %v1022_v0  ;;  %v1058_v0 = vand.u32 4294901760, %v1057_v46 }
 0x282   :  { %1128 = vmatpush.msrb.mxu1 %v1674_v27 }
 0x283   :  { %783 = vmatmul.f32.vlgmr.msrb.gmra.mxu3 %v586_v8  ;;  %v587_v12 = vsub.f32 %v585_v7, %v586_v8  ;;  %v1032_v7 = vand.u32 4294901760, %v1790_v57  ;;  %v1800_v8 = vand.u32 4294901760, %v915_v63 }
 0x284   :  { %1130 = vmatpush.msrb.mxu1 %v1696_v20 }
 0x285   :  { %v588_v13 = vand.u32 4294901760, %v587_v12  ;;  %v1805_v12 = vsub.f32 %v916_v44, %v1793_v58  ;;  %v1033_v21 = vsub.f32 %v1790_v57, %v1032_v7  ;;  %v1812_v32 = vsub.f32 %v915_v63, %v1800_v8  ;;  %954 = vmatpush.msra.mxu2 %v1800_v8 }
 0x286   :  { %1132 = vmatpush.msrb.mxu1 %v1701_v31  ;;  %v1061_v44 = vsub.f32 %v912_v59, %v1839_v10 }
 0x287   :  { %589 = vmatmul.f32.vlgmr.msrb.gmra.mxu0 %v588_v13  ;;  %889 = vmatmul.f32.vlgmr.msra.gmra.mxu1 %v584_v6  ;;  %v914_v13 = vld [vmem:[#allocation2 + $0xb0] sm:$0xff]  ;;  %v1038_v39 = vand.u32 4294901760, %v1805_v12  ;;  %v1034_v43 = vand.u32 4294901760, %v1033_v21  ;;  %v1044_v47 = vand.u32 4294901760, %v1812_v32 }
 0x288   :  { %1073 = vmatpush.msrb.mxu0 %v1677_v33  ;;  %1134 = vmatpush.msrb.mxu1 %v1709_v37  ;;  %v1814_v24 = vand.u32 4294901760, %v914_v13  ;;  %v1062_v63 = vand.u32 4294901760, %v1061_v44 }
 0x289   :  { %v1039_v52 = vsub.f32 %v1805_v12, %v1038_v39  ;;  %v1045_v60 = vsub.f32 %v1812_v32, %v1044_v47 }
 0x28a   :  { %1076 = vmatpush.msrb.mxu0 %v1680_v34  ;;  %1136 = vmatpush.msrb.mxu1 %v1721_v28  ;;  %v1822_v49 = vsub.f32 %v914_v13, %v1814_v24 }
 0x28b   :  { %956 = vmatpush.msra.mxu2 %v1814_v24  ;;  %v1040_v19 = vand.u32 4294901760, %v1039_v52  ;;  %v1046_v3 = vand.u32 4294901760, %v1045_v60 }
 0x28c   :  { %1079 = vmatpush.msrb.mxu0 %v1699_v29  ;;  %1138 = vmatpush.msrb.mxu1 %v1735_v62  ;;  %v1050_v61 = vand.u32 4294901760, %v1822_v49 }
 0x28d   :  { %958 = vmatpush.msra.mxu2 %v1824_v51 }
 0x28e   :  { %1082 = vmatpush.msrb.mxu0 %v1707_v36  ;;  %1140 = vmatpush.msrb.mxu1 %v1742_v55  ;;  %v1051_v35 = vsub.f32 %v1822_v49, %v1050_v61 }
 0x28f   :  { %852 = vmatmul.f32.vlgmr.msra.gmra.mxu0 %v584_v6  ;;  %v1027_v6 = vsub.f32 %v1778_v16, %v1026_v53  ;;  %960 = vmatpush.msra.mxu2 %v1839_v10 }
 0x290   :  { %1085 = vmatpush.msrb.mxu0 %v1719_v42  ;;  %1142 = vmatpush.msrb.mxu1 %v1756_v2  ;;  %v1052_v45 = vand.u32 4294901760, %v1051_v35 }
 0x291   :  { %v1028_v14 = vand.u32 4294901760, %v1027_v6  ;;  %1167 = vmatpush.msrb.mxu2 %v972_v38  ;;  %v1063_v6 = vsub.f32 %v1061_v44, %v1062_v63 }
 0x292   :  { %1088 = vmatpush.msrb.mxu0 %v1731_v50  ;;  %1144 = vmatpush.msrb.mxu1 %v1765_v18 }
 0x293   :  { %1029 = vmatpush.msra.mxu3 %v1028_v14  ;;  %1171 = vmatpush.msrb.mxu2 %v978_v22  ;;  %v1064_v13 = vand.u32 4294901760, %v1063_v6 }
 0x294   :  { %1091 = vmatpush.msrb.mxu0 %v1746_v56  ;;  %1146 = vmatpush.msrb.mxu1 %v1780_v26 }
 0x295   :  { %1035 = vmatpush.msra.mxu3 %v1034_v43  ;;  %1175 = vmatpush.msrb.mxu2 %v984_v4 }
 0x296   :  { %1094 = vmatpush.msrb.mxu0 %v1754_v1  ;;  %1148 = vmatpush.msrb.mxu1 %v1793_v58 }
 0x297   :  { %1041 = vmatpush.msra.mxu3 %v1040_v19  ;;  %1179 = vmatpush.msrb.mxu2 %v990_v25 }
 0x298   :  { %1097 = vmatpush.msrb.mxu0 %v1763_v17  ;;  %1150 = vmatpush.msrb.mxu1 %v1800_v8 }
 0x299   :  { %1047 = vmatpush.msra.mxu3 %v1046_v3  ;;  %1183 = vmatpush.msrb.mxu2 %v996_v48 }
 0x29a   :  { %1100 = vmatpush.msrb.mxu0 %v1778_v16  ;;  %1152 = vmatpush.msrb.mxu1 %v1814_v24 }
 0x29b   :  { %1053 = vmatpush.msra.mxu3 %v1052_v45  ;;  %1187 = vmatpush.msrb.mxu2 %v1002_v54 }
 0x29c   :  { %1103 = vmatpush.msrb.mxu0 %v1790_v57  ;;  %1154 = vmatpush.msrb.mxu1 %v1824_v51 }
 0x29d   :  { %1059 = vmatpush.msra.mxu3 %v1058_v0  ;;  %1191 = vmatpush.msrb.mxu2 %v1008_v5 }
 0x29e   :  { %1106 = vmatpush.msrb.mxu0 %v1805_v12  ;;  %1156 = vmatpush.msrb.mxu1 %v1839_v10 }
 0x29f   :  { %1065 = vmatpush.msra.mxu3 %v1064_v13  ;;  %1195 = vmatpush.msrb.mxu2 %v1014_v11 }
 0x2a0   :  { %1109 = vmatpush.msrb.mxu0 %v1812_v32 }
 0x2a1   :  { %1234 = vmatpush.msrb.mxu3 %v1672_v15  ;;  %v551_v15 = vperm.slane %v1427_v40, 2  ;;  %1199 = vmatpush.msrb.mxu2 %v1020_v23 }
 0x2a2   :  { %1112 = vmatpush.msrb.mxu0 %v1822_v49 }
 0x2a3   :  { %1236 = vmatpush.msrb.mxu3 %v1674_v27  ;;  %1203 = vmatpush.msrb.mxu2 %v1026_v53  ;;  %v1296_v53 = vld [vmem:[#allocation2 + $0x120] sm:$0xff] }
 0x2a4   :  { %1115 = vmatpush.msrb.mxu0 %v1837_v9  ;;  %v928_v57 = vperm.slane %v1296_v53, 3 }
 0x2a5   :  { %1238 = vmatpush.msrb.mxu3 %v1696_v20  ;;  %1207 = vmatpush.msrb.mxu2 %v1032_v7 }
 0x2a6   :  { %1118 = vmatpush.msrb.mxu0 %v1061_v44 }
 0x2a7   :  { %1240 = vmatpush.msrb.mxu3 %v1701_v31  ;;  %1211 = vmatpush.msrb.mxu2 %v1038_v39 }
 0x2a9   :  { %1242 = vmatpush.msrb.mxu3 %v1709_v37  ;;  %1215 = vmatpush.msrb.mxu2 %v1044_v47 }
 0x2ab   :  { %1244 = vmatpush.msrb.mxu3 %v1721_v28  ;;  %1219 = vmatpush.msrb.mxu2 %v1050_v61 }
 0x2ad   :  { %1246 = vmatpush.msrb.mxu3 %v1735_v62  ;;  %1223 = vmatpush.msrb.mxu2 %v1056_v41 }
 0x2af   :  { %1248 = vmatpush.msrb.mxu3 %v1742_v55  ;;  %1227 = vmatpush.msrb.mxu2 %v1062_v63 }
 0x2b1   :  { %1250 = vmatpush.msrb.mxu3 %v1756_v2 }
 0x2b3   :  { %1252 = vmatpush.msrb.mxu3 %v1765_v18 }
 0x2b5   :  { %1254 = vmatpush.msrb.mxu3 %v1780_v26 }
 0x2b7   :  { %1256 = vmatpush.msrb.mxu3 %v1793_v58 }
 0x2b9   :  { %1258 = vmatpush.msrb.mxu3 %v1800_v8 }
 0x2bb   :  { %1260 = vmatpush.msrb.mxu3 %v1814_v24 }
 0x2bd   :  { %1262 = vmatpush.msrb.mxu3 %v1824_v51 }
 0x2bf   :  { %1264 = vmatpush.msrb.mxu3 %v1839_v10 }
 0x2fc   :  { %v691_v27 = vpop.f32.mrf.mxu1 }
 0x304   :  { %v590_v33 = vpop.f32.mrf.mxu0  ;;  %v745_v40 = vpop.f32.mrf.mxu2 }
 0x305   :  { %v591_v34 = vadd.f32 %v590_v33, %v551_v15  ;;  %v890_v36 = vpop.f32.mrf.mxu1 }
 0x306   :  { %v784_v20 = vpop.f32.mrf.mxu3 }
 0x307   :  { %v692_v38 = vadd.f32 %v691_v27, %v591_v34 }
 0x309   :  { %v746_v22 = vadd.f32 %v745_v40, %v692_v38 }
 0x30b   :  { %v785_v29 = vadd.f32 %v784_v20, %v746_v22 }
 0x30c   :  { %v853_v31 = vpop.f32.mrf.mxu0 }
 0x30d   :  { %v854_v4 = vadd.f32 %v853_v31, %v785_v29 }
 0x30f   :  { %v891_v37 = vadd.f32 %v890_v36, %v854_v4 }
 0x311   :  { %v1277_v25 = vmul.f32 -1.442695, %v891_v37 }
 0x313   :  { %1292 = vpow2.f32 %v1277_v25 }
 0x319   :  { %v1293_v42 = vpop.eup %1292 }
 0x31a   :  { %v896_v28 = vadd.f32 1.0, %v1293_v42 }
 0x31c   :  { %1294 = vrcp.f32 %v896_v28  ;;  %v908_v54 = vand.u32 2147483648, %v896_v28  ;;  %v906_v56 = vand.u32 2147483647, %v896_v28  ;;  %vm902_vm14 = vweird.f32 %v896_v28 }
 0x31e   :  { %v909_v2 = vor.u32 1.1754944e-38, %v908_v54  ;;  %vm907_vm0 = vcmp.eq.f32.partialorder %v906_v56, 8.507059e+37 }
 0x322   :  { %v1295_v48 = vpop.eup %1294 }
 0x323   :  { %v898_v50 = vmul.f32 %v1295_v48, %v896_v28  ;;  %vm903_vm13 = vweird.f32 %v1295_v48 }
 0x324   :  { %vm904_vm15 = vmor %vm902_vm14, %vm903_vm13 }
 0x325   :  { %v899_v62 = vsub.f32 1.0, %v898_v50 }
 0x327   :  { %v900_v55 = vmul.f32 %v1295_v48, %v899_v62 }
 0x329   :  { %v901_v1 = vadd.f32 %v1295_v48, %v900_v55 }
 0x32b   :  { %v905_v5 = vsel %vm904_vm15, %v1295_v48, %v901_v1 }
 0x32c   :  { %v910_v11 = vsel %vm907_vm0, %v909_v2, %v905_v5 }
 0x32d   :  { %v961_v17 = vand.u32 4294901760, %v910_v11 }
 0x32f   :  { %1067 = vmatmul.f32.vlgmr.msra.gmra.mxu3 %v961_v17  ;;  %v962_v18 = vsub.f32 %v910_v11, %v961_v17 }
 0x331   :  { %1121 = vmatmul.f32.vlgmr.msrb.gmra.mxu0 %v962_v18  ;;  %v963_v23 = vand.u32 4294901760, %v962_v18 }
 0x333   :  { %1160 = vmatmul.f32.vlgmr.msrb.gmra.mxu1 %v963_v23  ;;  %v964_v16 = vsub.f32 %v962_v18, %v963_v23 }
 0x335   :  { %v965_v26 = vand.u32 4294901760, %v964_v16 }
 0x337   :  { %966 = vmatmul.f32.vlgmr.msra.gmra.mxu2 %v965_v26  ;;  %1266 = vmatmul.f32.vlgmr.msrb.gmra.mxu3 %v961_v17 }
 0x33f   :  { %1229 = vmatmul.f32.vlgmr.msrb.gmra.mxu2 %v961_v17 }
 0x3ae   :  { %v1122_v14 = vpop.f32.mrf.mxu0 }
 0x3b0   :  { %v1161_v32 = vpop.f32.mrf.mxu1 }
 0x3b2   :  { %v1068_v58 = vpop.f32.mrf.mxu3 }
 0x3ba   :  { %v967_v7 = vpop.f32.mrf.mxu2  ;;  %v1267_v43 = vpop.f32.mrf.mxu3 }
 0x3bb   :  { %v968_v8 = vadd.f32 %v967_v7, %v928_v57 }
 0x3bd   :  { %v1069_v12 = vadd.f32 %v1068_v58, %v968_v8 }
 0x3bf   :  { %v1123_v21 = vadd.f32 %v1122_v14, %v1069_v12 }
 0x3c1   :  { %v1162_v24 = vadd.f32 %v1161_v32, %v1123_v21 }
 0x3c2   :  { %v1230_v39 = vpop.f32.mrf.mxu2 }
 0x3c3   :  { %v1231_v30 = vadd.f32 %v1230_v39, %v1162_v24 }
 0x3c5   :  { %v1268_v47 = vadd.f32 %v1267_v43, %v1231_v30 }
 0x3c7   :  { %1270 = vst [vmem:[%s1901_s2] sm:$0xff] %v1268_v47 }
 0x3c8   :  { %1275 = vsyncpa [#allocation3], 1 }

</bundles_post_ra>
